<compile_context>
chip_gen: v6e
topology: v6e:2x2x1
jax: 0.10.0
libtpu: 0.0.40
codegen_flags: <defaults>
</compile_context>

<pallas_src>
import functools

import jax
import jax.numpy as jnp
from jax.experimental import pallas as pl
from jax.experimental.pallas import tpu as pltpu


def _round_up(x, m):
    return ((x + m - 1) // m) * m


def _mlp_kernel(x_ref, w1_ref, s1_ref, w2_ref, s2_ref, w3_ref, s3_ref, o_ref):
    """Fused 3-layer MLP on one batch tile: ReLU(x @ W + shift), three times.

    Weights (w*_ref) are bf16 (BN scale pre-folded); shifts (s*_ref) are f32 (1, C).
    Matmuls run on the bf16 MXU path with f32 accumulation; shift-add/ReLU stay f32.
    """
    s1 = s1_ref[...]
    s2 = s2_ref[...]
    s3 = s3_ref[...]

    x = x_ref[...].astype(jnp.bfloat16)

    h = jnp.dot(x, w1_ref[...], preferred_element_type=jnp.float32)
    h = jnp.maximum(h + s1, 0.0).astype(jnp.bfloat16)

    h = jnp.dot(h, w2_ref[...], preferred_element_type=jnp.float32)
    h = jnp.maximum(h + s2, 0.0).astype(jnp.bfloat16)

    h = jnp.dot(h, w3_ref[...], preferred_element_type=jnp.float32)
    h = jnp.maximum(h + s3, 0.0)

    o_ref[...] = h.astype(o_ref.dtype)


def _fold_layer(w, lin_b, gamma, beta, r_mean, r_var, eps=1e-5):
    """Fold Linear bias + BatchNorm1d (running stats) into (bf16 W', f32 shift)."""
    scale = gamma / jnp.sqrt(r_var + eps)
    w_folded = (w * scale[None, :]).astype(jnp.bfloat16)            # [cin, cout] bf16
    shift = (beta + (lin_b - r_mean) * scale).astype(jnp.float32)   # [cout] f32
    return w_folded, shift.reshape(1, -1)                           # shift as (1, cout)


def _choose_tile(n, tn_max):
    """Pick a batch tile.

    - n > tn_max: fixed large tile (multiple of 16 for bf16 (16,128) tiling); the ragged
      last block is masked by Pallas, so no wrapper-side jnp.pad / extra pass over x.
    - n <= tn_max: one full-extent block, except when the batch is large enough to split
      in two aligned tiles so both v7x TensorCores get a grid step.
    """
    if n > tn_max:
        return tn_max
    half = n // 2
    if n >= 1024 and half % 16 == 0:
        return half
    return n


def mlp_classifier_forward(x, params, n_classes, *, tn=4096):
    """x: [N, repr_size] float32. Returns [N, n_classes] float32 (eval-mode forward)."""
    w1, s1, w2, s2, w3p, s3p = params
    n, f = x.shape
    h1, h2 = w1.shape[1], w2.shape[1]
    c_pad = w3p.shape[1]  # lane-padded class dim (multiple of 128)

    tile = _choose_tile(n, tn)
    grid = (pl.cdiv(n, tile),)

    def resident(arr):
        # Constant index map -> block stays resident in VMEM across grid steps.
        return pl.BlockSpec(arr.shape, lambda i: (0, 0))

    cost = pl.CostEstimate(
        flops=2 * n * (f * h1 + h1 * h2 + h2 * c_pad),
        transcendentals=0,
        bytes_accessed=(4 * n * f                       # f32 activations in
                        + 2 * n * c_pad                 # bf16 logits out
                        + 2 * (f * h1 + h1 * h2 + h2 * c_pad)   # bf16 weights
                        + 4 * (h1 + h2 + c_pad)),       # f32 shifts
    )

    out = pl.pallas_call(
        _mlp_kernel,
        out_shape=jax.ShapeDtypeStruct((n, c_pad), jnp.bfloat16),
        grid=grid,
        in_specs=[
            pl.BlockSpec((tile, f), lambda i: (i, 0)),   # batch-tiled activations
            resident(w1), resident(s1),
            resident(w2), resident(s2),
            resident(w3p), resident(s3p),
        ],
        out_specs=pl.BlockSpec((tile, c_pad), lambda i: (i, 0)),
        compiler_params=pltpu.CompilerParams(
            dimension_semantics=("parallel",),   # lets v7x split the batch across both TCs
            vmem_limit_bytes=48 << 20,
        ),
        cost_estimate=cost,
    )(x, w1, s1, w2, s2, w3p, s3p)

    # Slice off lane padding and upcast the (tiny) result; wrapper-side cost is negligible.
    return out[:, :n_classes].astype(jnp.float32)


def init_params(key, repr_size, n_classes):
    """Deterministic synthetic parameters with the same shapes as the PyTorch module,
    folded (bf16 weights / f32 shifts). Last layer zero-padded to a 128-lane-dense width."""
    dims = [(repr_size, 256), (256, 128), (128, n_classes)]
    folded = []
    for i, (cin, cout) in enumerate(dims):
        k = jax.random.fold_in(key, i)
        kw, kb, kg, kbeta, km, kv = jax.random.split(k, 6)
        bound = 1.0 / jnp.sqrt(cin)
        # Linear weight stored as [cin, cout] (transpose of PyTorch [cout, cin]).
        w = jax.random.uniform(kw, (cin, cout), jnp.float32, -bound, bound)
        b = jax.random.uniform(kb, (cout,), jnp.float32, -bound, bound)
        # BatchNorm1d parameters / running stats (nontrivial but deterministic).
        gamma = 1.0 + 0.1 * jax.random.normal(kg, (cout,), jnp.float32)
        beta = 0.1 * jax.random.normal(kbeta, (cout,), jnp.float32)
        r_mean = 0.05 * jax.random.normal(km, (cout,), jnp.float32)
        r_var = 1.0 + 0.1 * jax.random.uniform(kv, (cout,), jnp.float32)
        folded.append(_fold_layer(w, b, gamma, beta, r_mean, r_var))

    (w1, s1), (w2, s2), (w3, s3) = folded

    # Lane-pad the classifier layer to a multiple of 128 output columns with exact zeros,
    # so padded logits stay exactly 0 through dot + shift + ReLU and can be sliced off.
    c_pad = _round_up(n_classes, 128)
    w3p = jnp.zeros((w3.shape[0], c_pad), jnp.bfloat16).at[:, :n_classes].set(w3)
    s3p = jnp.zeros((1, c_pad), jnp.float32).at[:, :n_classes].set(s3)

    return (w1, s1, w2, s2, w3p, s3p)


if __name__ == "__main__":
    key = jax.random.PRNGKey(0)
    batch, repr_size, n_classes = 8, 64, 10

    params = init_params(key, repr_size, n_classes)
    x = jax.random.normal(jax.random.fold_in(key, 999), (batch, repr_size), jnp.float32)

    fwd = jax.jit(functools.partial(mlp_classifier_forward, n_classes=n_classes))
    out = jax.block_until_ready(fwd(x, params))

    assert out.shape == (batch, n_classes), out.shape
    assert out.dtype == jnp.float32

    # Pure-JAX reference with the same bf16-matmul / f32-accumulate chain.
    w1, s1, w2, s2, w3p, s3p = params
    xb = x.astype(jnp.bfloat16)
    h = jnp.maximum(jnp.dot(xb, w1, preferred_element_type=jnp.float32) + s1, 0.0)
    h = jnp.maximum(jnp.dot(h.astype(jnp.bfloat16), w2,
                            preferred_element_type=jnp.float32) + s2, 0.0)
    h = jnp.maximum(jnp.dot(h.astype(jnp.bfloat16), w3p,
                            preferred_element_type=jnp.float32) + s3p, 0.0)
    ref = h[:, :n_classes].astype(jnp.bfloat16).astype(jnp.float32)
    assert jnp.allclose(out, ref, atol=5e-2, rtol=5e-2), float(jnp.abs(out - ref).max())

    print("KERNEL_OK")
</pallas_src>

<mosaic_0001>
module attributes {stable_mosaic.version = 11 : i64} {
  func.func @_mlp_kernel(%arg0: i32, %arg1: memref<8x64xf32, #tpu.memory_space<vmem>>, %arg2: memref<64x256xbf16, #tpu.memory_space<vmem>>, %arg3: memref<1x256xf32, #tpu.memory_space<vmem>>, %arg4: memref<256x128xbf16, #tpu.memory_space<vmem>>, %arg5: memref<1x128xf32, #tpu.memory_space<vmem>>, %arg6: memref<128x128xbf16, #tpu.memory_space<vmem>>, %arg7: memref<1x128xf32, #tpu.memory_space<vmem>>, %arg8: memref<8x128xbf16, #tpu.memory_space<vmem>>) attributes {dimension_semantics = [#tpu.dimension_semantics<parallel>], iteration_bounds = array<i64: 1>, scalar_prefetch = 0 : i64, scratch_operands = 0 : i64, tpu.core_type = #tpu.core_type<tc>, window_params = [{transform_indices = @transform_0, window_bounds = array<i64: 8, 64>}, {pipeline_mode = #tpu.pipeline_mode<synchronous>, transform_indices = @transform_1, window_bounds = array<i64: 64, 256>}, {pipeline_mode = #tpu.pipeline_mode<synchronous>, transform_indices = @transform_2, window_bounds = array<i64: 1, 256>}, {pipeline_mode = #tpu.pipeline_mode<synchronous>, transform_indices = @transform_3, window_bounds = array<i64: 256, 128>}, {pipeline_mode = #tpu.pipeline_mode<synchronous>, transform_indices = @transform_4, window_bounds = array<i64: 1, 128>}, {pipeline_mode = #tpu.pipeline_mode<synchronous>, transform_indices = @transform_5, window_bounds = array<i64: 128, 128>}, {pipeline_mode = #tpu.pipeline_mode<synchronous>, transform_indices = @transform_6, window_bounds = array<i64: 1, 128>}, {transform_indices = @transform_7, window_bounds = array<i64: 8, 128>}]} {
    %c0 = arith.constant 0 : index
    %c0_0 = arith.constant 0 : index
    %0 = vector.load %arg3[%c0, %c0_0] : memref<1x256xf32, #tpu.memory_space<vmem>>, vector<1x256xf32>
    %c0_1 = arith.constant 0 : index
    %c0_2 = arith.constant 0 : index
    %1 = vector.load %arg5[%c0_1, %c0_2] : memref<1x128xf32, #tpu.memory_space<vmem>>, vector<1x128xf32>
    %c0_3 = arith.constant 0 : index
    %c0_4 = arith.constant 0 : index
    %2 = vector.load %arg7[%c0_3, %c0_4] : memref<1x128xf32, #tpu.memory_space<vmem>>, vector<1x128xf32>
    %c0_5 = arith.constant 0 : index
    %c0_6 = arith.constant 0 : index
    %3 = vector.load %arg1[%c0_5, %c0_6] : memref<8x64xf32, #tpu.memory_space<vmem>>, vector<8x64xf32>
    %4 = arith.truncf %3 : vector<8x64xf32> to vector<8x64xbf16>
    %c0_7 = arith.constant 0 : index
    %c0_8 = arith.constant 0 : index
    %5 = vector.load %arg2[%c0_7, %c0_8] : memref<64x256xbf16, #tpu.memory_space<vmem>>, vector<64x256xbf16>
    %cst = arith.constant dense<0.000000e+00> : vector<8x256xf32>
    %6 = tpu.matmul %4, %5, %cst {dimension_numbers = #tpu.dot_dimension_numbers<[1], [0], [0], [1], [0, 0, 1, 1], [], []>} : vector<8x64xbf16>, vector<64x256xbf16>, vector<8x256xf32> -> vector<8x256xf32>
    %7 = vector.broadcast %0 : vector<1x256xf32> to vector<8x256xf32>
    %8 = arith.addf %6, %7 : vector<8x256xf32>
    %cst_9 = arith.constant 0.000000e+00 : f32
    %9 = vector.broadcast %cst_9 : f32 to vector<8x256xf32>
    %10 = arith.maximumf %8, %9 : vector<8x256xf32>
    %11 = arith.truncf %10 : vector<8x256xf32> to vector<8x256xbf16>
    %c0_10 = arith.constant 0 : index
    %c0_11 = arith.constant 0 : index
    %12 = vector.load %arg4[%c0_10, %c0_11] : memref<256x128xbf16, #tpu.memory_space<vmem>>, vector<256x128xbf16>
    %cst_12 = arith.constant dense<0.000000e+00> : vector<8x128xf32>
    %13 = tpu.matmul %11, %12, %cst_12 {dimension_numbers = #tpu.dot_dimension_numbers<[1], [0], [0], [1], [0, 0, 1, 1], [], []>} : vector<8x256xbf16>, vector<256x128xbf16>, vector<8x128xf32> -> vector<8x128xf32>
    %14 = vector.broadcast %1 : vector<1x128xf32> to vector<8x128xf32>
    %15 = arith.addf %13, %14 : vector<8x128xf32>
    %cst_13 = arith.constant 0.000000e+00 : f32
    %16 = vector.broadcast %cst_13 : f32 to vector<8x128xf32>
    %17 = arith.maximumf %15, %16 : vector<8x128xf32>
    %18 = arith.truncf %17 : vector<8x128xf32> to vector<8x128xbf16>
    %c0_14 = arith.constant 0 : index
    %c0_15 = arith.constant 0 : index
    %19 = vector.load %arg6[%c0_14, %c0_15] : memref<128x128xbf16, #tpu.memory_space<vmem>>, vector<128x128xbf16>
    %cst_16 = arith.constant dense<0.000000e+00> : vector<8x128xf32>
    %20 = tpu.matmul %18, %19, %cst_16 {dimension_numbers = #tpu.dot_dimension_numbers<[1], [0], [0], [1], [0, 0, 1, 1], [], []>} : vector<8x128xbf16>, vector<128x128xbf16>, vector<8x128xf32> -> vector<8x128xf32>
    %21 = vector.broadcast %2 : vector<1x128xf32> to vector<8x128xf32>
    %22 = arith.addf %20, %21 : vector<8x128xf32>
    %cst_17 = arith.constant 0.000000e+00 : f32
    %23 = vector.broadcast %cst_17 : f32 to vector<8x128xf32>
    %24 = arith.maximumf %22, %23 : vector<8x128xf32>
    %25 = arith.truncf %24 : vector<8x128xf32> to vector<8x128xbf16>
    %c0_18 = arith.constant 0 : index
    %c0_19 = arith.constant 0 : index
    %26 = vector.load %arg8[%c0_18, %c0_19] : memref<8x128xbf16, #tpu.memory_space<vmem>>, vector<8x128xbf16>
    tpu.vector_store %arg8[%c0_18, %c0_19], %25 {strides = array<i32>} : memref<8x128xbf16, #tpu.memory_space<vmem>>, vector<8x128xbf16>,
    return
  }
  func.func @transform_0(%arg0: i32) -> (i32, i32) {
    %c0_i32 = arith.constant 0 : i32
    %c0_i32_0 = arith.constant 0 : i32
    return %arg0, %c0_i32 : i32, i32
  }
  func.func @transform_1(%arg0: i32) -> (i32, i32) {
    %c0_i32 = arith.constant 0 : i32
    %c0_i32_0 = arith.constant 0 : i32
    %c0_i32_1 = arith.constant 0 : i32
    return %c0_i32, %c0_i32_0 : i32, i32
  }
  func.func @transform_2(%arg0: i32) -> (i32, i32) {
    %c0_i32 = arith.constant 0 : i32
    %c0_i32_0 = arith.constant 0 : i32
    %c0_i32_1 = arith.constant 0 : i32
    return %c0_i32, %c0_i32_0 : i32, i32
  }
  func.func @transform_3(%arg0: i32) -> (i32, i32) {
    %c0_i32 = arith.constant 0 : i32
    %c0_i32_0 = arith.constant 0 : i32
    %c0_i32_1 = arith.constant 0 : i32
    return %c0_i32, %c0_i32_0 : i32, i32
  }
  func.func @transform_4(%arg0: i32) -> (i32, i32) {
    %c0_i32 = arith.constant 0 : i32
    %c0_i32_0 = arith.constant 0 : i32
    %c0_i32_1 = arith.constant 0 : i32
    return %c0_i32, %c0_i32_0 : i32, i32
  }
  func.func @transform_5(%arg0: i32) -> (i32, i32) {
    %c0_i32 = arith.constant 0 : i32
    %c0_i32_0 = arith.constant 0 : i32
    %c0_i32_1 = arith.constant 0 : i32
    return %c0_i32, %c0_i32_0 : i32, i32
  }
  func.func @transform_6(%arg0: i32) -> (i32, i32) {
    %c0_i32 = arith.constant 0 : i32
    %c0_i32_0 = arith.constant 0 : i32
    %c0_i32_1 = arith.constant 0 : i32
    return %c0_i32, %c0_i32_0 : i32, i32
  }
  func.func @transform_7(%arg0: i32) -> (i32, i32) {
    %c0_i32 = arith.constant 0 : i32
    %c0_i32_0 = arith.constant 0 : i32
    return %arg0, %c0_i32 : i32, i32
  }
}

</mosaic_0001>

<bundles_post_ra>
// kernel: mlp_classifier_forward.1
= control target key start
LH: loop header
LB: loop body
LE: loop exit
PB: predicated region body
PF: predicated region fallthrough
CT: control target
= control target key end

     0   :  { %12 = vsyncpa [#allocation3], 0  ;;  %s783_s0 = inlined_call_operand.hbm [shape: f32[8,64], index: 0, kind: input, shape index: {}]   ;;  %s784_s1 = inlined_call_operand.hbm [shape: bf16[64,256], index: 1, kind: input, shape index: {}]   ;;  %s785_s2 = inlined_call_operand.vmem [shape: f32[1,256], index: 2, kind: input, shape index: {}]   ;;  %s786_s3 = inlined_call_operand.hbm [shape: bf16[256,128], index: 3, kind: input, shape index: {}]   ;;  %s787_s4 = inlined_call_operand.vmem [shape: f32[1,128], index: 4, kind: input, shape index: {}]   ;;  %s788_s5 = inlined_call_operand.hbm [shape: bf16[128,128], index: 5, kind: input, shape index: {}]   ;;  %s789_s6 = inlined_call_operand.vmem [shape: f32[1,128], index: 6, kind: input, shape index: {}]   ;;  %s790_s7 = inlined_call_operand.vmem [shape: bf16[8,128], index: 7, kind: output, shape index: {}]  }
   0x1   :  { %13 = vsyncpa [#allocation5], 0 }
   0x2   :  { %14 = vsyncpa [#allocation8], 0  ;;  %s708_s24 = smov [#allocation4]  }
   0x3   :  { %s30_s25 = sshll.u32 %s708_s24, 4  ;;  %s31_s25 = int_to_ptr.vmem [resolvable:$true] %s30_s25 }
   0x4   :  { %s630_s26 = scalar_lea.vmem %s31_s25, 1024  ;;  %p635_p1 = scmp.lt.s32.totalorder %s31_s25, %s31_s25 }
   0x5   :  { %p631_p0 = scmp.ne.s32.totalorder %s31_s25, %s630_s26  ;;  %p636_p2 = scmp.lt.s32.totalorder %s630_s26, %s630_s26 }
   0x7   :  { %p637_p3 = por %p636_p2, %p635_p1 }
   0x9   :  { %p638_p4 = pnand %p637_p3, %p631_p0 }
   0xb   :  { %641 = shalt.err (!%p638_p4)
}
   0xc   :  { %s709_s27 = smov 128   ;;  %s710_s28 = smov 8  }
   0xd   :  { %36 = dma.hbm_to_vmem [thread:$0]  %s784_s1, 1024, %s31_s25, [#allocation5], %s709_s27, %s709_s27, %s710_s28  }
   0xe   :  { %s711_s8 = smov [#allocation2]   ;;  %s712_s10 = smov [#allocation6]  }
   0xf   :  { %s21_s9 = sshll.u32 %s711_s8, 4  ;;  %s44_s11 = sshll.u32 %s712_s10, 4  ;;  %s22_s9 = int_to_ptr.vmem [resolvable:$true] %s21_s9  ;;  %s45_s11 = int_to_ptr.vmem [resolvable:$true] %s44_s11 }
  0x10   :  { %s650_s12 = scalar_lea.vmem %s22_s9, 128  ;;  %p655_p6 = scmp.lt.s32.totalorder %s22_s9, %s22_s9 }
  0x11   :  { %p651_p5 = scmp.ne.s32.totalorder %s22_s9, %s650_s12  ;;  %p656_p7 = scmp.lt.s32.totalorder %s650_s12, %s650_s12 }
  0x13   :  { %p657_p8 = por %p656_p7, %p655_p6 }
  0x15   :  { %p658_p9 = pnand %p657_p8, %p651_p5 }
  0x17   :  { %661 = shalt.err (!%p658_p9)
}
  0x18   :  { %24 = dma.hbm_to_vmem [thread:$0]  %s783_s0, 128, %s22_s9, [#allocation3]  }
  0x19   :  { %s670_s15 = scalar_lea.vmem %s45_s11, 2048  ;;  %p675_p11 = scmp.lt.s32.totalorder %s45_s11, %s45_s11 }
  0x1a   :  { %p671_p10 = scmp.ne.s32.totalorder %s45_s11, %s670_s15  ;;  %p676_p12 = scmp.lt.s32.totalorder %s670_s15, %s670_s15 }
  0x1c   :  { %p677_p13 = por %p676_p12, %p675_p11 }
  0x1e   :  { %p678_p0 = pnand %p677_p13, %p671_p10 }
  0x20   :  { %681 = shalt.err (!%p678_p0)
}
  0x21   :  { %s713_s1 = smov 64   ;;  %s714_s16 = smov 4  }
  0x22   :  { %50 = dma.hbm_to_vmem [thread:$0]  %s786_s3, 2048, %s45_s11, [#allocation5], %s713_s1, %s713_s1, %s714_s16  }
  0x23   :  { %s715_s19 = smov [#allocation7]  }
  0x24   :  { %s58_s20 = sshll.u32 %s715_s19, 4  ;;  %s59_s20 = int_to_ptr.vmem [resolvable:$true] %s58_s20 }
  0x25   :  { %s690_s21 = scalar_lea.vmem %s59_s20, 1024  ;;  %p695_p2 = scmp.lt.s32.totalorder %s59_s20, %s59_s20 }
  0x26   :  { %p691_p1 = scmp.ne.s32.totalorder %s59_s20, %s690_s21  ;;  %p696_p3 = scmp.lt.s32.totalorder %s690_s21, %s690_s21 }
  0x28   :  { %p697_p4 = por %p696_p3, %p695_p2 }
  0x2a   :  { %p698_p5 = pnand %p697_p4, %p691_p1 }
  0x2c   :  { %701 = shalt.err (!%p698_p5)
}
  0x2d   :  { %64 = dma.hbm_to_vmem [thread:$0]  %s788_s5, 1024, %s59_s20, [#allocation8], %s713_s1, %s713_s1, %s714_s16  }
  0x2e   :  { %702 = dma.done.wait [#allocation3], 128  }
  0x2f   :  { %703 = vsyncadd [#allocation3], 4294967168 }
  0x30   :  { %704 = dma.done.wait [#allocation5], 3072  }
  0x31   :  { %705 = vsyncadd [#allocation5], 4294964224 }
  0x32   :  { %706 = dma.done.wait [#allocation8], 1024  }
  0x33   :  { %707 = vsyncadd [#allocation8], 4294966272  ;;  %v716_v0 = vmov 0   ;;  %v586_v1 = vld [vmem:[#allocation4 + $0x34] ss:$8 sps:$4 sm:$0xff]   ;;  %v602_v13 = vld [vmem:[#allocation6 + $0x68] sm:$0xff]   ;;  %v94_v33 = vlaneseq }
  0x34   :  { %180 = vmatprep.mubr.bf16.mxu0 %v716_v0  ;;  %v588_v2 = vld [vmem:[#allocation4 + $0x30] ss:$8 sps:$4 sm:$0xff]   ;;  %156 = vmatprep.subr.bf16.mxu0 %v586_v1  ;;  %v589_v3 = vld [vmem:[#allocation4 + $0x24] ss:$8 sps:$4 sm:$0xff]   ;;  %v591_v4 = vld [vmem:[#allocation4 + $0x20] ss:$8 sps:$4 sm:$0xff]  }
  0x35   :  { %157 = vmatpush1.bf16.msra.mxu0 %v588_v2  ;;  %v592_v5 = vld [vmem:[#allocation4 + $0x14] ss:$8 sps:$4 sm:$0xff]   ;;  %v594_v6 = vld [vmem:[#allocation4 + $0x10] ss:$8 sps:$4 sm:$0xff]   ;;  %v595_v7 = vld [vmem:[#allocation4 + $0x4] ss:$8 sps:$4 sm:$0xff]  }
  0x36   :  { %158 = vmatprep.subr.bf16.mxu0 %v589_v3  ;;  %v598_v8 = vld [vmem:[#allocation6 + $0x78] sm:$0xff]   ;;  %v600_v10 = vld [vmem:[#allocation6 + $0x70] sm:$0xff]   ;;  %v597_v11 = vld [vmem:[#allocation4] ss:$8 sps:$4 sm:$0xff]   ;;  %vm144_vm0 = vcmask 523264   ;;  %v717_v28 = vmov 0.0  }
  0x37   :  { %v599_v9 = vld [vmem:[#allocation6 + $0x38] sm:$0xff]   ;;  %524 = vmatprep.subr.bf16.mxu1 %v598_v8  ;;  %v601_v12 = vld [vmem:[#allocation6 + $0x30] sm:$0xff]   ;;  %v603_v15 = vld [vmem:[#allocation6 + $0x28] sm:$0xff]   ;;  %v95_v34 = vshrl.u32 %v94_v33, 7  ;;  %vm718_vm1 = vmmov 0  }
  0x38   :  { %525 = vmatpush3.bf16.msra.mxu1 %v599_v9  ;;  %v83_v14 = vld [vmem:[#allocation2] sm:$0xff]  ;;  %v604_v17 = vld [vmem:[#allocation6 + $0x60] sm:$0xff]   ;;  %v608_v21 = vld [vmem:[#allocation6 + $0x50] sm:$0xff]  }
  0x39   :  { %159 = vmatpush1.bf16.msra.mxu0 %v591_v4  ;;  %526 = vmatprep.subr.bf16.mxu1 %v600_v10  ;;  %v84_v16 = vpack.c.bf16 %v83_v14, %v83_v14  ;;  %v605_v18 = vld [vmem:[#allocation6 + $0x20] sm:$0xff]   ;;  %v606_v19 = vld [vmem:[#allocation6 + $0x58] sm:$0xff]   ;;  %v609_v22 = vld [vmem:[#allocation6 + $0x10] sm:$0xff]   ;;  %v96_v35 = vsub.s32 0, %v95_v34  ;;  %v100_v37 = vsub.s32 1, %v95_v34 }
  0x3a   :  { %160 = vmatprep.subr.bf16.mxu0 %v592_v5  ;;  %v607_v20 = vld [vmem:[#allocation6 + $0x18] sm:$0xff]   ;;  %v610_v23 = vld [vmem:[#allocation6 + $0x48] sm:$0xff]   ;;  %v612_v25 = vld [vmem:[#allocation6 + $0x40] sm:$0xff]  }
  0x3b   :  { %v611_v24 = vld [vmem:[#allocation6 + $0x8] sm:$0xff]   ;;  %v613_v26 = vld [vmem:[#allocation6] sm:$0xff]   ;;  %v614_v27 = vld [vmem:[#allocation7 + $0x38] sm:$0xff]  }
  0x3c   :  { %527 = vmatpush3.bf16.msra.mxu1 %v601_v12  ;;  %v615_v29 = vld [vmem:[#allocation7 + $0x30] sm:$0xff]   ;;  %v616_v30 = vld [vmem:[#allocation7 + $0x28] sm:$0xff]   ;;  %v617_v31 = vld [vmem:[#allocation7 + $0x20] sm:$0xff]  }
  0x3d   :  { %161 = vmatpush1.bf16.msra.mxu0 %v594_v6  ;;  %528 = vmatprep.subr.bf16.mxu1 %v602_v13  ;;  %v618_v32 = vld [vmem:[#allocation7 + $0x18] sm:$0xff]   ;;  %v619_v50 = vld [vmem:[#allocation7 + $0x10] sm:$0xff]   ;;  %v620_v51 = vld [vmem:[#allocation7 + $0x8] sm:$0xff]  }
  0x3e   :  { %162 = vmatprep.subr.bf16.mxu0 %v595_v7  ;;  %v80_v36 = vld [vmem:[%s785_s2] sm:$0x3]  ;;  %v621_v52 = vld [vmem:[#allocation7] sm:$0xff]  }
  0x3f   :  { %v97_v38 = vrot.slane %v80_v36, %v96_v35  ;;  %v101_v39 = vrot.slane %v80_v36, %v100_v37  ;;  %v498_v54 = vld [vmem:[%s787_s4] ss:$0 sm:$0xff] }
  0x40   :  { %529 = vmatpush3.bf16.msra.mxu1 %v603_v15  ;;  %v515_v62 = vld [vmem:[%s789_s6] ss:$0 sm:$0xff] }
  0x41   :  { %163 = vmatpush1.bf16.msra.mxu0 %v597_v11  ;;  %530 = vmatprep.subr.bf16.mxu1 %v604_v17 }
  0x42   :  { %555 = vmatprep.subr.bf16.mxu0 %v717_v28 }
  0x44   :  { %497 = vmatmul.mubr.msk.bf16.vlgmr.msra.gmra.mxu0 %vm144_vm0, %v84_v16  ;;  %531 = vmatpush3.bf16.msra.mxu1 %v605_v18 }
  0x45   :  { %532 = vmatprep.subr.bf16.mxu1 %v606_v19  ;;  %556 = vmatpush3.bf16.msra.mxu0 %v614_v27 }
  0x46   :  { %557 = vmatprep.subr.bf16.mxu0 %v717_v28  ;;  %571 = vmatprep.mubr.msk.bf16.mxu0 %vm718_vm1, %v717_v28 }
  0x48   :  { %533 = vmatpush3.bf16.msra.mxu1 %v607_v20 }
  0x49   :  { %534 = vmatprep.subr.bf16.mxu1 %v608_v21  ;;  %558 = vmatpush3.bf16.msra.mxu0 %v615_v29 }
  0x4a   :  { %559 = vmatprep.subr.bf16.mxu0 %v717_v28 }
  0x4c   :  { %535 = vmatpush3.bf16.msra.mxu1 %v609_v22 }
  0x4d   :  { %536 = vmatprep.subr.bf16.mxu1 %v610_v23  ;;  %560 = vmatpush3.bf16.msra.mxu0 %v616_v30 }
  0x4e   :  { %561 = vmatprep.subr.bf16.mxu0 %v717_v28 }
  0x50   :  { %537 = vmatpush3.bf16.msra.mxu1 %v611_v24 }
  0x51   :  { %538 = vmatprep.subr.bf16.mxu1 %v612_v25  ;;  %562 = vmatpush3.bf16.msra.mxu0 %v617_v31 }
  0x52   :  { %563 = vmatprep.subr.bf16.mxu0 %v717_v28 }
  0x54   :  { %539 = vmatpush3.bf16.msra.mxu1 %v613_v26 }
  0x55   :  { %564 = vmatpush3.bf16.msra.mxu0 %v618_v32 }
  0x56   :  { %565 = vmatprep.subr.bf16.mxu0 %v717_v28 }
  0x59   :  { %566 = vmatpush3.bf16.msra.mxu0 %v619_v50 }
  0x5a   :  { %567 = vmatprep.subr.bf16.mxu0 %v717_v28 }
  0x5d   :  { %568 = vmatpush3.bf16.msra.mxu0 %v620_v51 }
  0x5e   :  { %569 = vmatprep.subr.bf16.mxu0 %v717_v28 }
  0x61   :  { %570 = vmatpush3.bf16.msra.mxu0 %v621_v52 }
 0x104   :  { %v182_v40 = vpop.f32.mrf.mxu0 }
 0x105   :  { %v183_v41 = vadd.f32 %v182_v40, %v97_v38 }
 0x106   :  { %v184_v42 = vpop.f32.mrf.mxu0 }
 0x107   :  { %v185_v43 = vadd.f32 %v184_v42, %v101_v39  ;;  %v189_v44 = vmax.f32 %v183_v41, 0.0 }
 0x108   :  { %v186_v45 = vpop.f32.mrf.mxu0 }
 0x109   :  { %v190_v46 = vmax.f32 %v185_v43, 0.0  ;;  %v191_v49 = vpack.c.bf16 %v189_v44, %v189_v44 }
 0x10a   :  { %v187_v47 = vpop.f32.mrf.mxu0 }
 0x10b   :  { %v192_v48 = vpack.c.bf16 %v190_v46, %v190_v46 }
 0x10d   :  { %359 = vmatprep.mubr.bf16.mxu1 %v192_v48 }
 0x10e   :  { %360 = vmatmul.mubr.bf16.vlgmr.msra.gmra.mxu1 %v191_v49 }
 0x1ce   :  { %v540_v53 = vpop.f32.mrf.mxu1 }
 0x1d0   :  { %v541_v55 = vpop.f32.mrf.mxu1 }
 0x1d1   :  { %v542_v56 = vadd.f32 %v541_v55, %v540_v53 }
 0x1d2   :  { %v543_v57 = vpop.f32.mrf.mxu1 }
 0x1d3   :  { %v362_v58 = vadd.f32 %v542_v56, %v498_v54 }
 0x1d4   :  { %v544_v59 = vpop.f32.mrf.mxu1 }
 0x1d5   :  { %v367_v60 = vmax.f32 %v362_v58, 0.0 }
 0x1d7   :  { %v368_v61 = vpack.c.bf16 %v367_v60, %v367_v60 }
 0x1d9   :  { %572 = vmatmul.mubr.bf16.vlgmr.msra.gmra.mxu0 %v368_v61 }
 0x299   :  { %v473_v63 = vpop.f32.mrf.mxu0 }
 0x29a   :  { %v474_v0 = vadd.f32 %v515_v62, %v473_v63 }
 0x29b   :  { %v573_v1 = vpop.f32.mrf.mxu0 }
 0x29c   :  { %v479_v2 = vmax.f32 %v474_v0, 0.0 }
 0x29d   :  { %v476_v3 = vpop.f32.mrf.mxu0 }
 0x29e   :  { %v480_v4 = vpack.c.bf16 %v479_v2, %v479_v2 }
 0x29f   :  { %v574_v5 = vpop.f32.mrf.mxu0 }
 0x2a0   :  { %481 = vst [vmem:[%s790_s7] sm:$0xf] %v480_v4 }
 0x2a1   :  { %486 = vsyncpa [#allocation3], 1 }
 0x2a2   :  { %487 = vsyncpa [#allocation5], 1 }
 0x2a3   :  { %488 = vsyncpa [#allocation8], 1 }

</bundles_post_ra>
